<compile_context>
chip_gen: v7x
topology: tpu7x:2x2x1
jax: 0.10.0
libtpu: 0.0.40
codegen_flags: <defaults>
</compile_context>

<pallas_src>
import jax
import jax.numpy as jnp
from jax.experimental import pallas as pl
from jax.experimental.pallas import tpu as pltpu

EMBED = 32        # embedding dim
VAR_RANGE = 16    # var.range (vocabulary size)
VAR_MIN = 1       # var.min   (subtracted before lookup)

MAX_TILE_R = 2048          # max packed rows per grid step (was 512; pipeline-overhead bound)
MIN_PALLAS_TOKENS = 1024   # below this, a plain XLA gather beats the kernel launch


def _default_pack():
    """PACK=8 fills the 256-wide MXU on v6e/v7x; older 128-wide MXUs keep PACK=4."""
    try:
        kind = jax.devices()[0].device_kind.lower()
    except Exception:
        return 8
    for old in ("v2", "v3", "v4", "v5"):
        if old in kind:
            return 4
    return 8


PACK = _default_pack()
ONEHOT_W = PACK * VAR_RANGE   # matmul K (64 on v5e, 128 on v6e/v7x)
OUT_W = PACK * EMBED          # matmul N / output lane width (128 / 256)


def _cdiv(a, b):
    return -(-a // b)


def _round_up(x, m):
    return _cdiv(x, m) * m


def make_block_diag_table(table):
    """(V, E) f32 table -> (PACK*V, PACK*E) block-diagonal bf16 table. Built once at init."""
    table = table.astype(jnp.bfloat16)
    V, E = table.shape
    bd = jnp.zeros((PACK * V, PACK * E), jnp.bfloat16)
    for j in range(PACK):
        bd = bd.at[j * V:(j + 1) * V, j * E:(j + 1) * E].set(table)
    return bd


def embed_kernel(key_ref, table_ref, out_ref):
    # key_ref:   (TILE_R, PACK) int32, key[r, j] = (x - VAR_MIN) + j*VAR_RANGE
    # table_ref: (PACK*V, PACK*E) bf16 block-diagonal table (VMEM-resident)
    # out_ref:   (TILE_R, PACK*E) f32
    rows = out_ref.shape[0]
    keys = key_ref[...]
    col = jax.lax.broadcasted_iota(jnp.int32, (rows, ONEHOT_W), 1)
    hit = keys[:, 0:1] == col
    for j in range(1, PACK):
        hit = hit | (keys[:, j:j + 1] == col)
    onehot = hit.astype(jnp.bfloat16)          # exact 0/1 in bf16
    # single weight pass on the MXU: (TILE_R, PACK*V) @ (PACK*V, PACK*E), f32 acc
    out_ref[...] = jnp.dot(onehot, table_ref[...],
                           preferred_element_type=jnp.float32)


def _tiling(rows_needed):
    """Pick (tile_r, steps): big tiles (amortize ~0.35us/step overhead) but >=2
    grid steps when possible (megacore sharding on v7x) and <= one tile of padding."""
    steps = max(2, _cdiv(rows_needed, MAX_TILE_R))
    tile_r = _round_up(_cdiv(rows_needed, steps), 8)
    if tile_r * (steps - 1) >= rows_needed:   # rounding made a step redundant
        steps = max(1, _cdiv(rows_needed, tile_r))
    return tile_r, steps


def embedding_forward(x_int, table_bd, *, min_pallas_tokens=MIN_PALLAS_TOKENS):
    """x_int: (B, S) int in [VAR_MIN, VAR_MIN + VAR_RANGE). Returns (B, S, EMBED) f32."""
    B, S = x_int.shape
    N = B * S

    if N < min_pallas_tokens:
        # Fast path: at this size the pallas_call is pure launch/pipeline overhead.
        table = table_bd[:VAR_RANGE, :EMBED]
        ids = (x_int.astype(jnp.int32) - VAR_MIN).reshape(-1)
        return table[ids].astype(jnp.float32).reshape(B, S, EMBED)

    rows_needed = _cdiv(N, PACK)
    tile_r, steps = _tiling(rows_needed)
    rows_pad = tile_r * steps
    n_pad = rows_pad * PACK

    # key[r, j] = (x[PACK*r + j] - VAR_MIN) + j*VAR_RANGE.  Pad tokens get a
    # negative key so padded rows come out all-zero; they are sliced off below
    # -- do NOT remove the [:N] slice.
    x_flat = x_int.reshape(N).astype(jnp.int32) - VAR_MIN
    x_flat = jnp.pad(x_flat, (0, n_pad - N), constant_values=-ONEHOT_W)
    keys = x_flat.reshape(rows_pad, PACK) + (
        jnp.arange(PACK, dtype=jnp.int32) * VAR_RANGE)[None, :]

    cost = pl.CostEstimate(
        flops=2 * rows_pad * ONEHOT_W * OUT_W,
        transcendentals=0,
        bytes_accessed=rows_pad * PACK * 4 + ONEHOT_W * OUT_W * 2 + rows_pad * OUT_W * 4,
    )

    out = pl.pallas_call(
        embed_kernel,
        out_shape=jax.ShapeDtypeStruct((rows_pad, OUT_W), jnp.float32),
        grid_spec=pltpu.PrefetchScalarGridSpec(
            num_scalar_prefetch=0,
            grid=(steps,),
            in_specs=[
                pl.BlockSpec((tile_r, PACK), lambda i: (i, 0)),
                pl.BlockSpec((PACK * VAR_RANGE, OUT_W), lambda i: (0, 0)),  # resident
            ],
            out_specs=pl.BlockSpec((tile_r, OUT_W), lambda i: (i, 0)),
        ),
        compiler_params=pltpu.CompilerParams(
            dimension_semantics=("parallel",)),
        cost_estimate=cost,
    )(keys, table_bd)

    # Packed (rows_pad, PACK*E) -> (B, S, E).  This is a physical relayout on
    # TPU (minor dim 128/256 -> 32); consumers that can read the packed layout
    # should take `out` directly and skip it.
    # TODO(synk): fuse this relayout into the downstream consumer.
    return out.reshape(rows_pad * PACK, EMBED)[:N].reshape(B, S, EMBED)


if __name__ == "__main__":
    key = jax.random.PRNGKey(0)
    k_tab, k_x1, k_x2 = jax.random.split(key, 3)

    # deterministic synthetic parameters (nn.Embedding(range, dim).weight)
    table_f32 = jax.random.normal(k_tab, (VAR_RANGE, EMBED), dtype=jnp.float32)
    table_bd = make_block_diag_table(table_f32)                 # built once at init
    # kernel numerics: table rounded to bf16 (the one-hot matmul is otherwise exact)
    table_ref = table_f32.astype(jnp.bfloat16).astype(jnp.float32)

    # small shape implied by the module's usage: batch=2, seq=8 (force Pallas path)
    B, S = 2, 8
    x = jax.random.randint(k_x1, (B, S), VAR_MIN, VAR_MIN + VAR_RANGE, dtype=jnp.int32)
    out = jax.block_until_ready(embedding_forward(x, table_bd, min_pallas_tokens=0))
    ref = table_ref[(x - VAR_MIN).reshape(-1)].reshape(B, S, EMBED)
    assert out.shape == (B, S, EMBED)
    assert jnp.allclose(out, ref, atol=1e-6), "small-shape mismatch"

    # the XLA-gather fast path must agree with the kernel
    out_fast = jax.block_until_ready(embedding_forward(x, table_bd))
    assert jnp.allclose(out_fast, ref, atol=1e-6), "fast-path mismatch"

    # larger case exercising multiple pipelined grid steps (4096 tokens)
    B2, S2 = 4, 1024
    x2 = jax.random.randint(k_x2, (B2, S2), VAR_MIN, VAR_MIN + VAR_RANGE, dtype=jnp.int32)
    out2 = jax.block_until_ready(embedding_forward(x2, table_bd))
    ref2 = table_ref[(x2 - VAR_MIN).reshape(-1)].reshape(B2, S2, EMBED)
    assert jnp.allclose(out2, ref2, atol=1e-6), "tiled-grid mismatch"

    print("KERNEL_OK")
</pallas_src>

<mosaic_0001>
module attributes {stable_mosaic.version = 11 : i64} {
  func.func @embed_kernel(%arg0: i32, %arg1: memref<8x8xi32, #tpu.memory_space<vmem>>, %arg2: memref<128x256xbf16, #tpu.memory_space<vmem>>, %arg3: memref<8x256xf32, #tpu.memory_space<vmem>>) attributes {dimension_semantics = [#tpu.dimension_semantics<parallel>], iteration_bounds = array<i64: 1>, scalar_prefetch = 0 : i64, scratch_operands = 0 : i64, tpu.core_type = #tpu.core_type<tc>, window_params = [{transform_indices = @transform_0, window_bounds = array<i64: 8, 8>}, {pipeline_mode = #tpu.pipeline_mode<synchronous>, transform_indices = @transform_1, window_bounds = array<i64: 128, 256>}, {transform_indices = @transform_2, window_bounds = array<i64: 8, 256>}]} {
    %c0 = arith.constant 0 : index
    %c0_0 = arith.constant 0 : index
    %0 = vector.load %arg1[%c0, %c0_0] : memref<8x8xi32, #tpu.memory_space<vmem>>, vector<8x8xi32>
    %1 = tpu.iota {dimensions = array<i32: 1>} : vector<8x128xi32>
    %2 = vector.extract_strided_slice %0 {offsets = [0, 0], sizes = [8, 1], strides = [1, 1]} : vector<8x8xi32> to vector<8x1xi32>
    %3 = vector.broadcast %2 : vector<8x1xi32> to vector<8x128xi32>
    %4 = arith.cmpi eq, %3, %1 : vector<8x128xi32>
    %5 = vector.extract_strided_slice %0 {offsets = [0, 1], sizes = [8, 1], strides = [1, 1]} : vector<8x8xi32> to vector<8x1xi32>
    %6 = vector.broadcast %5 : vector<8x1xi32> to vector<8x128xi32>
    %7 = arith.cmpi eq, %6, %1 : vector<8x128xi32>
    %8 = arith.ori %4, %7 : vector<8x128xi1>
    %9 = vector.extract_strided_slice %0 {offsets = [0, 2], sizes = [8, 1], strides = [1, 1]} : vector<8x8xi32> to vector<8x1xi32>
    %10 = vector.broadcast %9 : vector<8x1xi32> to vector<8x128xi32>
    %11 = arith.cmpi eq, %10, %1 : vector<8x128xi32>
    %12 = arith.ori %8, %11 : vector<8x128xi1>
    %13 = vector.extract_strided_slice %0 {offsets = [0, 3], sizes = [8, 1], strides = [1, 1]} : vector<8x8xi32> to vector<8x1xi32>
    %14 = vector.broadcast %13 : vector<8x1xi32> to vector<8x128xi32>
    %15 = arith.cmpi eq, %14, %1 : vector<8x128xi32>
    %16 = arith.ori %12, %15 : vector<8x128xi1>
    %17 = vector.extract_strided_slice %0 {offsets = [0, 4], sizes = [8, 1], strides = [1, 1]} : vector<8x8xi32> to vector<8x1xi32>
    %18 = vector.broadcast %17 : vector<8x1xi32> to vector<8x128xi32>
    %19 = arith.cmpi eq, %18, %1 : vector<8x128xi32>
    %20 = arith.ori %16, %19 : vector<8x128xi1>
    %21 = vector.extract_strided_slice %0 {offsets = [0, 5], sizes = [8, 1], strides = [1, 1]} : vector<8x8xi32> to vector<8x1xi32>
    %22 = vector.broadcast %21 : vector<8x1xi32> to vector<8x128xi32>
    %23 = arith.cmpi eq, %22, %1 : vector<8x128xi32>
    %24 = arith.ori %20, %23 : vector<8x128xi1>
    %25 = vector.extract_strided_slice %0 {offsets = [0, 6], sizes = [8, 1], strides = [1, 1]} : vector<8x8xi32> to vector<8x1xi32>
    %26 = vector.broadcast %25 : vector<8x1xi32> to vector<8x128xi32>
    %27 = arith.cmpi eq, %26, %1 : vector<8x128xi32>
    %28 = arith.ori %24, %27 : vector<8x128xi1>
    %29 = vector.extract_strided_slice %0 {offsets = [0, 7], sizes = [8, 1], strides = [1, 1]} : vector<8x8xi32> to vector<8x1xi32>
    %30 = vector.broadcast %29 : vector<8x1xi32> to vector<8x128xi32>
    %31 = arith.cmpi eq, %30, %1 : vector<8x128xi32>
    %32 = arith.ori %28, %31 : vector<8x128xi1>
    %33 = arith.extui %32 : vector<8x128xi1> to vector<8x128xi32>
    %34 = arith.sitofp %33 : vector<8x128xi32> to vector<8x128xf32>
    %35 = arith.truncf %34 : vector<8x128xf32> to vector<8x128xbf16>
    %c0_1 = arith.constant 0 : index
    %c0_2 = arith.constant 0 : index
    %36 = vector.load %arg2[%c0_1, %c0_2] : memref<128x256xbf16, #tpu.memory_space<vmem>>, vector<128x256xbf16>
    %cst = arith.constant dense<0.000000e+00> : vector<8x256xf32>
    %37 = tpu.matmul %35, %36, %cst {dimension_numbers = #tpu.dot_dimension_numbers<[1], [0], [0], [1], [0, 0, 1, 1], [], []>} : vector<8x128xbf16>, vector<128x256xbf16>, vector<8x256xf32> -> vector<8x256xf32>
    %c0_3 = arith.constant 0 : index
    %c0_4 = arith.constant 0 : index
    %38 = vector.load %arg3[%c0_3, %c0_4] : memref<8x256xf32, #tpu.memory_space<vmem>>, vector<8x256xf32>
    tpu.vector_store %arg3[%c0_3, %c0_4], %37 {strides = array<i32>} : memref<8x256xf32, #tpu.memory_space<vmem>>, vector<8x256xf32>,
    return
  }
  func.func @transform_0(%arg0: i32) -> (i32, i32) {
    %c0_i32 = arith.constant 0 : i32
    %c0_i32_0 = arith.constant 0 : i32
    return %arg0, %c0_i32 : i32, i32
  }
  func.func @transform_1(%arg0: i32) -> (i32, i32) {
    %c0_i32 = arith.constant 0 : i32
    %c0_i32_0 = arith.constant 0 : i32
    %c0_i32_1 = arith.constant 0 : i32
    return %c0_i32, %c0_i32_0 : i32, i32
  }
  func.func @transform_2(%arg0: i32) -> (i32, i32) {
    %c0_i32 = arith.constant 0 : i32
    %c0_i32_0 = arith.constant 0 : i32
    return %arg0, %c0_i32 : i32, i32
  }
}

</mosaic_0001>

<bundles_post_ra>
// kernel: tpu_custom_call.1
= control target key start
LH: loop header
LB: loop body
LE: loop exit
PB: predicated region body
PF: predicated region fallthrough
CT: control target
= control target key end

     0   :  { %7 = vsyncpa [#allocation3], 0  ;;  %s447_s0 = inlined_call_operand.hbm [shape: s32[8,8], index: 0, kind: input, shape index: {}]   ;;  %s448_s1 = inlined_call_operand.hbm [shape: bf16[128,256], index: 1, kind: input, shape index: {}]   ;;  %s449_s2 = inlined_call_operand.hbm [shape: f32[8,256], index: 2, kind: output, shape index: {}]  }
   0x1   :  { %8 = vsyncpa [#allocation6], 0 }
   0x2   :  { %9 = vsyncpa [#allocation4], 0  ;;  %s375_s9 = smov [#allocation2]   ;;  %s376_s11 = smov [#allocation5]  }
   0x3   :  { %s16_s10 = sshll.u32 %s375_s9, 4  ;;  %s25_s12 = sshll.u32 %s376_s11, 4  ;;  %s17_s10 = int_to_ptr.vmem [resolvable:$true] %s16_s10  ;;  %s404_s12 = int_to_ptr.vmem [resolvable:$true] %s25_s12 }
   0x4   :  { %s303_s15 = scalar_lea.hbm %s447_s0, 128 }
   0x5   :  { %p304_p0 = scmp.ne.s32.totalorder %s447_s0, %s303_s15  ;;  %p307_p1 = scmp.lt.u32.totalorder %s303_s15, %s447_s0 }
   0x7   :  { %p309_p2 = pnand %p307_p1, %p304_p0 }
   0x9   :  { %312 = shalt.err (!%p309_p2)
}
   0xa   :  { %s313_s20 = scalar_lea.vmem %s17_s10, 128  ;;  %p318_p4 = scmp.lt.s32.totalorder %s17_s10, %s17_s10 }
   0xb   :  { %p314_p3 = scmp.ne.s32.totalorder %s17_s10, %s313_s20  ;;  %p319_p5 = scmp.lt.s32.totalorder %s313_s20, %s313_s20 }
   0xd   :  { %p320_p6 = por %p319_p5, %p318_p4 }
   0xf   :  { %p321_p7 = pnand %p320_p6, %p314_p3 }
  0x11   :  { %324 = shalt.err (!%p321_p7)
}
  0x12   :  { %19 = dma.hbm_to_vmem [thread:$0]  %s447_s0, 128, %s17_s10, [#allocation3]  }
  0x13   :  { %s325_s25 = scalar_lea.hbm %s448_s1, 2048 }
  0x14   :  { %p326_p8 = scmp.ne.s32.totalorder %s448_s1, %s325_s25  ;;  %p329_p9 = scmp.lt.u32.totalorder %s325_s25, %s448_s1 }
  0x16   :  { %p331_p10 = pnand %p329_p9, %p326_p8 }
  0x18   :  { %334 = shalt.err (!%p331_p10)
}
  0x19   :  { %s335_s30 = scalar_lea.vmem %s404_s12, 2048  ;;  %p340_p12 = scmp.lt.s32.totalorder %s404_s12, %s404_s12 }
  0x1a   :  { %p336_p11 = scmp.ne.s32.totalorder %s404_s12, %s335_s30  ;;  %p341_p13 = scmp.lt.s32.totalorder %s335_s30, %s335_s30 }
  0x1c   :  { %p342_p0 = por %p341_p13, %p340_p12 }
  0x1e   :  { %p343_p1 = pnand %p342_p0, %p336_p11 }
  0x20   :  { %346 = shalt.err (!%p343_p1)
}
  0x21   :  { %s377_s0 = smov 128   ;;  %s378_s3 = smov 8  }
  0x22   :  { %31 = dma.hbm_to_vmem [thread:$0]  %s448_s1, 2048, %s404_s12, [#allocation6], %s377_s0, %s377_s0, %s378_s3  }
  0x23   :  { %369 = dma.done.wait [#allocation3], 128  }
  0x24   :  { %370 = vsyncadd [#allocation3], 4294967168 }
  0x25   :  { %371 = dma.done.wait [#allocation6], 2048  }
  0x26   :  { %372 = vsyncadd [#allocation6], 4294965248  ;;  %v379_v0 = vmov 2   ;;  %v380_v1 = vmov 0   ;;  %v39_v2 = vld [vmem:[#allocation2] sm:$0xff]  ;;  %v381_v7 = vmov 3   ;;  %v40_v27 = vlaneseq }
  0x27   :  { %272 = vset.pattern.permute.xlu1 %v379_v0  ;;  %270 = vset.pattern.permute.xlu0 %v380_v1  ;;  %v279_v3 = vld [vmem:[#allocation5 + $0x4] ss:$8 sps:$4 sm:$0xff]   ;;  %v281_v4 = vld [vmem:[#allocation5] ss:$8 sps:$4 sm:$0xff]   ;;  %v282_v5 = vld [vmem:[#allocation5 + $0x14] ss:$8 sps:$4 sm:$0xff]  }
  0x28   :  { %212 = vmatprep.mubr.bf16.mxu0 %v380_v1  ;;  %52 = vperm.xlu1 %272, %v39_v2   ;;  %v284_v6 = vld [vmem:[#allocation5 + $0x10] ss:$8 sps:$4 sm:$0xff]   ;;  %v382_v8 = vmov 1   ;;  %v285_v9 = vld [vmem:[#allocation5 + $0x24] ss:$8 sps:$4 sm:$0xff]   ;;  %v383_v12 = vmov 4  }
  0x29   :  { %43 = vperm.xlu0 %270, %v39_v2   ;;  %180 = vmatprep.subr.bf16.mxu0 %v279_v3  ;;  %v287_v10 = vld [vmem:[#allocation5 + $0x20] ss:$8 sps:$4 sm:$0xff]   ;;  %v288_v11 = vld [vmem:[#allocation5 + $0x34] ss:$8 sps:$4 sm:$0xff]   ;;  %v384_v13 = vmov 5   ;;  %v385_v16 = vmov 6  }
  0x2a   :  { %181 = vmatpush1.bf16.msra.mxu0 %v281_v4  ;;  %v290_v14 = vld [vmem:[#allocation5 + $0x30] ss:$8 sps:$4 sm:$0xff]   ;;  %v291_v15 = vld [vmem:[#allocation5 + $0x44] ss:$8 sps:$4 sm:$0xff]   ;;  %v386_v17 = vmov 7   ;;  %v41_v28 = vand.u32 127, %v40_v27 }
  0x2b   :  { %182 = vmatprep.subr.bf16.mxu0 %v282_v5  ;;  %v293_v18 = vld [vmem:[#allocation5 + $0x40] ss:$8 sps:$4 sm:$0xff]   ;;  %v294_v19 = vld [vmem:[#allocation5 + $0x54] ss:$8 sps:$4 sm:$0xff]   ;;  %v296_v20 = vld [vmem:[#allocation5 + $0x50] ss:$8 sps:$4 sm:$0xff]  }
  0x2c   :  { %273 = vset.pattern.permute.xlu1 %v381_v7  ;;  %v297_v21 = vld [vmem:[#allocation5 + $0x64] ss:$8 sps:$4 sm:$0xff]   ;;  %v299_v22 = vld [vmem:[#allocation5 + $0x60] ss:$8 sps:$4 sm:$0xff]   ;;  %v300_v23 = vld [vmem:[#allocation5 + $0x74] ss:$8 sps:$4 sm:$0xff]  }
  0x2d   :  { %271 = vset.pattern.permute.xlu0 %v382_v8  ;;  %57 = vperm.xlu1 %273, %v39_v2   ;;  %v302_v24 = vld [vmem:[#allocation5 + $0x70] ss:$8 sps:$4 sm:$0xff]   ;;  %v387_v35 = vmov 0.0   ;;  %s388_s1 = smov [#allocation7]  }
  0x2e   :  { %47 = vperm.xlu0 %271, %v39_v2   ;;  %183 = vmatpush1.bf16.msra.mxu0 %v284_v6  ;;  %s229_s6 = sshll.u32 %s388_s1, 4  ;;  %s230_s6 = int_to_ptr.vmem [resolvable:$true] %s229_s6 }
  0x2f   :  { %184 = vmatprep.subr.bf16.mxu0 %v285_v9  ;;  %s347_s7 = scalar_lea.vmem %s230_s6, 256  ;;  %p352_p3 = scmp.lt.s32.totalorder %s230_s6, %s230_s6 }
  0x30   :  { %p348_p2 = scmp.ne.s32.totalorder %s230_s6, %s347_s7  ;;  %p353_p4 = scmp.lt.s32.totalorder %s347_s7, %s347_s7 }
  0x31   :  { %274 = vset.pattern.permute.xlu1 %v383_v12 }
  0x32   :  { %275 = vset.pattern.permute.xlu0 %v384_v13  ;;  %62 = vperm.xlu1 %274, %v39_v2   ;;  %p354_p5 = por %p353_p4, %p352_p3 }
  0x33   :  { %67 = vperm.xlu0 %275, %v39_v2   ;;  %185 = vmatpush1.bf16.msra.mxu0 %v287_v10 }
  0x34   :  { %186 = vmatprep.subr.bf16.mxu0 %v288_v11  ;;  %p355_p6 = pnand %p354_p5, %p348_p2 }
  0x36   :  { %276 = vset.pattern.permute.xlu1 %v385_v16 }
  0x37   :  { %278 = vset.pattern.permute.xlu0 %v386_v17  ;;  %72 = vperm.xlu1 %276, %v39_v2  }
  0x38   :  { %187 = vmatpush1.bf16.msra.mxu0 %v290_v14 }
  0x39   :  { %188 = vmatprep.subr.bf16.mxu0 %v291_v15 }
  0x3b   :  { %277 = vset.pattern.permute.xlu1 %v386_v17 }
  0x3c   :  { %189 = vmatpush1.bf16.msra.mxu0 %v293_v18  ;;  %77 = vperm.xlu1 %277, %v39_v2  }
  0x3d   :  { %190 = vmatprep.subr.bf16.mxu0 %v294_v19 }
  0x40   :  { %191 = vmatpush1.bf16.msra.mxu0 %v296_v20 }
  0x41   :  { %192 = vmatprep.subr.bf16.mxu0 %v297_v21 }
  0x44   :  { %193 = vmatpush1.bf16.msra.mxu0 %v299_v22 }
  0x45   :  { %194 = vmatprep.subr.bf16.mxu0 %v300_v23 }
  0x48   :  { %195 = vmatpush1.bf16.msra.mxu0 %v302_v24 }
  0xa7   :  { %v53_v25 = vpop.permute.xlu1 %52 }
  0xa8   :  { %v44_v26 = vpop.permute.xlu0 %43  ;;  %vm54_vm3 = vcmp.eq.s32.totalorder %v53_v25, %v41_v28 }
  0xa9   :  { %vm45_vm0 = vcmp.eq.s32.totalorder %v44_v26, %v41_v28 }
  0xac   :  { %v58_v29 = vpop.permute.xlu1 %57 }
  0xad   :  { %v48_v30 = vpop.permute.xlu0 %47  ;;  %vm59_vm6 = vcmp.eq.s32.totalorder %v58_v29, %v41_v28 }
  0xae   :  { %vm49_vm1 = vcmp.eq.s32.totalorder %v48_v30, %v41_v28 }
  0xaf   :  { %vm50_vm2 = vmor %vm45_vm0, %vm49_vm1 }
  0xb0   :  { %vm55_vm4 = vmor %vm50_vm2, %vm54_vm3 }
  0xb1   :  { %v63_v31 = vpop.permute.xlu1 %62  ;;  %vm60_vm7 = vmor %vm55_vm4, %vm59_vm6 }
  0xb2   :  { %vm64_vm5 = vcmp.eq.s32.totalorder %v63_v31, %v41_v28  ;;  %v68_v32 = vpop.permute.xlu0 %67 }
  0xb3   :  { %vm65_vm8 = vmor %vm60_vm7, %vm64_vm5  ;;  %vm69_vm9 = vcmp.eq.s32.totalorder %v68_v32, %v41_v28 }
  0xb4   :  { %vm70_vm11 = vmor %vm65_vm8, %vm69_vm9 }
  0xb6   :  { %v73_v33 = vpop.permute.xlu1 %72 }
  0xb7   :  { %vm74_vm10 = vcmp.eq.s32.totalorder %v73_v33, %v41_v28 }
  0xb8   :  { %vm75_vm12 = vmor %vm70_vm11, %vm74_vm10 }
  0xbb   :  { %v78_v34 = vpop.permute.xlu1 %77 }
  0xbc   :  { %vm79_vm13 = vcmp.eq.s32.totalorder %v78_v34, %v41_v28 }
  0xbd   :  { %vm80_vm14 = vmor %vm75_vm12, %vm79_vm13 }
  0xbe   :  { %v239_v36 = vsel %vm80_vm14, 1.0, %v387_v35 }
  0xbf   :  { %v83_v37 = vpack.c.bf16 %v239_v36, %v239_v36 }
  0xc1   :  { %213 = vmatmul.mubr.bf16.vlgmr.msra.gmra.mrb[0].mxu0 %v83_v37 }
 0x194   :  { %v214_v38 = vpop.f32.mrb[0].mxu0 }
 0x195   :  { %221 = vst [vmem:[#allocation7] sm:$0xff] %v214_v38  ;;  %v216_v39 = vpop.f32.mrb[1].mxu0 }
 0x196   :  { %222 = vst [vmem:[#allocation7 + $0x8] sm:$0xff] %v216_v39  ;;  %v218_v40 = vpop.f32.mrb[2].mxu0 }
 0x197   :  { %v219_v41 = vpop.f32.mrb[3].mxu0 }
 0x198   :  { %358 = shalt.err (!%p355_p6)
}
 0x199   :  { %s359_s10 = scalar_lea.hbm %s449_s2, 256 }
 0x19a   :  { %p360_p7 = scmp.ne.s32.totalorder %s449_s2, %s359_s10  ;;  %p363_p8 = scmp.lt.u32.totalorder %s359_s10, %s449_s2 }
 0x19c   :  { %p365_p9 = pnand %p363_p8, %p360_p7 }
 0x19e   :  { %368 = shalt.err (!%p365_p9)
}
 0x19f   :  { %232 = dma.vmem_to_hbm [thread:$0]  %s230_s6, 256, %s449_s2, [#allocation4]  }
 0x1a0   :  { %373 = dma.done.wait [#allocation4], 256  }
 0x1a1   :  { %374 = vsyncadd [#allocation4], 4294967040 }
 0x1a2   :  { %236 = vsyncpa [#allocation3], 1 }
 0x1a3   :  { %237 = vsyncpa [#allocation6], 1 }
 0x1a4   :  { %238 = vsyncpa [#allocation4], 1 }

</bundles_post_ra>
